<compile_context>
chip_gen: v7x
topology: tpu7x:2x2x1
jax: 0.10.0
libtpu: 0.0.40
codegen_flags: <defaults>
</compile_context>

<pallas_src>
import jax
import jax.numpy as jnp
from jax.experimental import pallas as pl
from jax.experimental.pallas import tpu as pltpu


def _round_up(x, m):
    return ((x + m - 1) // m) * m


def _feat_classifier_kernel(xt_ref, w1t_ref, b1_ref, w2_ref, b2_ref, out_ref):
    # xt_ref : (D, TILE_B)  bf16   features on sublanes, batch on lanes
    # w1t_ref: (H, D)       bf16   first-layer weight, (out, in) orientation
    # b1_ref : (H, 1)       f32
    # w2_ref : (H, 1)       f32    second-layer weight as a column
    # b2_ref : (1,)         f32    scalar bias in SMEM
    # out_ref: (1, TILE_B)  f32    lane-dense logits slab
    h = jnp.dot(w1t_ref[...], xt_ref[...],
                preferred_element_type=jnp.float32)          # MXU, (H, TILE_B)
    h = jnp.maximum(h + b1_ref[...], 0.0)                    # VPU bias + ReLU (f32)
    # N=1 projection as VPU multiply + XLU sublane reduce (no wasted MXU pass);
    # result lands directly in lane-major (1, TILE_B) layout.
    o = jnp.sum(h * w2_ref[...], axis=0, keepdims=True)      # (1, TILE_B)
    out_ref[...] = (o + b2_ref[0]).astype(out_ref.dtype)


def feat_classifier(x, w1, b1, w2, b2, *, tile_b=512):
    """Forward pass of FeatClassifier.

    x : (B, input_dim) float32
    w1: (input_dim, hidden) ; b1: (hidden,)
    w2: (hidden, 1) (or (1, hidden)/(hidden,)) ; b2: (1,) scalar
    Returns (B, 1) float32 logits (no sigmoid/loss, matching the PyTorch forward).
    """
    B, D = x.shape
    H = w1.shape[1]

    # Tile the batch along the lane axis: multiples of 128, capped at tile_b.
    tile_b = min(tile_b, _round_up(B, 128))
    b_pad = _round_up(B, tile_b)
    num_tiles = b_pad // tile_b

    # Layout plumbing in the wrapper: feature-major, bf16 for the MXU, pad batch.
    xt = x.astype(jnp.bfloat16).T                      # (D, B)
    if b_pad != B:
        xt = jnp.pad(xt, ((0, 0), (0, b_pad - B)))
    w1t = jnp.asarray(w1, jnp.float32).astype(jnp.bfloat16).T   # (H, D)
    b1c = jnp.asarray(b1, jnp.float32).reshape(H, 1)
    w2c = jnp.asarray(w2, jnp.float32).reshape(H, 1)
    b2s = jnp.asarray(b2, jnp.float32).reshape(1)

    out = pl.pallas_call(
        _feat_classifier_kernel,
        out_shape=jax.ShapeDtypeStruct((1, b_pad), jnp.float32),
        grid=(num_tiles,),
        in_specs=[
            pl.BlockSpec((D, tile_b), lambda i: (0, i)),     # x tile (pipelined)
            pl.BlockSpec((H, D), lambda i: (0, 0)),          # W1^T, VMEM-resident
            pl.BlockSpec((H, 1), lambda i: (0, 0)),          # b1,   VMEM-resident
            pl.BlockSpec((H, 1), lambda i: (0, 0)),          # w2,   VMEM-resident
            pl.BlockSpec(memory_space=pltpu.MemorySpace.SMEM),  # b2 scalar in SMEM
        ],
        out_specs=pl.BlockSpec((1, tile_b), lambda i: (0, i)),  # lane-dense output
        compiler_params=pltpu.CompilerParams(
            dimension_semantics=("parallel",),               # shard across TCs (v7x)
            vmem_limit_bytes=32 * 1024 * 1024,               # safe on v5e/v6e/v7x
        ),
    )(xt, w1t, b1c, w2c, b2s)

    return out[0, :B].reshape(B, 1)


def _init_linear(key, in_features, out_features, dtype=jnp.float32):
    """Deterministic nn.Linear-style init: U(-1/sqrt(in), 1/sqrt(in)).
    Weight returned as (in_features, out_features); bias as (out_features,)."""
    kw, kb = jax.random.split(key)
    bound = 1.0 / (in_features ** 0.5)
    w = jax.random.uniform(kw, (in_features, out_features), dtype,
                           minval=-bound, maxval=bound)
    b = jax.random.uniform(kb, (out_features,), dtype,
                           minval=-bound, maxval=bound)
    return w, b


if __name__ == "__main__":
    batch = 1000          # non-multiple of the tile to exercise padding + 2 grid steps
    input_dim = 16
    hidden_dim = 32

    key = jax.random.PRNGKey(0)
    kx, k1, k2 = jax.random.split(key, 3)

    x = jax.random.normal(kx, (batch, input_dim), jnp.float32)
    w1, b1 = _init_linear(k1, input_dim, hidden_dim)
    w2, b2 = _init_linear(k2, hidden_dim, 1)

    out = feat_classifier(x, w1, b1, w2, b2)
    out = jax.block_until_ready(out)

    # Pure-JAX f32 reference (same semantics as the PyTorch forward).
    ref = jnp.maximum(x @ w1 + b1[None, :], 0.0) @ w2 + b2[None, :]
    assert out.shape == (batch, 1)
    # bf16 MXU inputs -> loosened tolerance (f32 accumulation keeps it tight).
    assert jnp.allclose(out, ref, atol=2e-2, rtol=2e-2), \
        float(jnp.max(jnp.abs(out - ref)))

    # TODO(synk): BCEWithLogitsLoss and the activation_function ctor arg are
    # defined in __init__ but unused in forward (forward hardcodes ReLU); not
    # implemented here.
    print("KERNEL_OK")
</pallas_src>

<mosaic_0001>
module attributes {stable_mosaic.version = 11 : i64} {
  func.func @_feat_classifier_kernel(%arg0: i32, %arg1: memref<16x512xbf16, #tpu.memory_space<vmem>>, %arg2: memref<32x16xbf16, #tpu.memory_space<vmem>>, %arg3: memref<32x1xf32, #tpu.memory_space<vmem>>, %arg4: memref<32x1xf32, #tpu.memory_space<vmem>>, %arg5: memref<1xf32, #tpu.memory_space<smem>>, %arg6: memref<1x512xf32, #tpu.memory_space<vmem>>) attributes {dimension_semantics = [#tpu.dimension_semantics<parallel>], iteration_bounds = array<i64: 2>, scalar_prefetch = 0 : i64, scratch_operands = 0 : i64, tpu.core_type = #tpu.core_type<tc>, window_params = [{transform_indices = @transform_0, window_bounds = array<i64: 16, 512>}, {pipeline_mode = #tpu.pipeline_mode<synchronous>, transform_indices = @transform_1, window_bounds = array<i64: 32, 16>}, {pipeline_mode = #tpu.pipeline_mode<synchronous>, transform_indices = @transform_2, window_bounds = array<i64: 32, 1>}, {pipeline_mode = #tpu.pipeline_mode<synchronous>, transform_indices = @transform_3, window_bounds = array<i64: 32, 1>}, {transform_indices = @transform_4, window_bounds = array<i64: 1>}, {transform_indices = @transform_5, window_bounds = array<i64: 1, 512>}]} {
    %c0 = arith.constant 0 : index
    %c0_0 = arith.constant 0 : index
    %0 = vector.load %arg2[%c0, %c0_0] : memref<32x16xbf16, #tpu.memory_space<vmem>>, vector<32x16xbf16>
    %c0_1 = arith.constant 0 : index
    %c0_2 = arith.constant 0 : index
    %1 = vector.load %arg1[%c0_1, %c0_2] : memref<16x512xbf16, #tpu.memory_space<vmem>>, vector<16x512xbf16>
    %cst = arith.constant dense<0.000000e+00> : vector<32x512xf32>
    %2 = tpu.matmul %0, %1, %cst {dimension_numbers = #tpu.dot_dimension_numbers<[1], [0], [0], [1], [0, 0, 1, 1], [], []>} : vector<32x16xbf16>, vector<16x512xbf16>, vector<32x512xf32> -> vector<32x512xf32>
    %c0_3 = arith.constant 0 : index
    %c0_4 = arith.constant 0 : index
    %3 = vector.load %arg3[%c0_3, %c0_4] : memref<32x1xf32, #tpu.memory_space<vmem>>, vector<32x1xf32>
    %4 = vector.broadcast %3 : vector<32x1xf32> to vector<32x512xf32>
    %5 = arith.addf %2, %4 : vector<32x512xf32>
    %cst_5 = arith.constant 0.000000e+00 : f32
    %6 = vector.broadcast %cst_5 : f32 to vector<32x512xf32>
    %7 = arith.maximumf %5, %6 : vector<32x512xf32>
    %c0_6 = arith.constant 0 : index
    %c0_7 = arith.constant 0 : index
    %8 = vector.load %arg4[%c0_6, %c0_7] : memref<32x1xf32, #tpu.memory_space<vmem>>, vector<32x1xf32>
    %9 = vector.broadcast %8 : vector<32x1xf32> to vector<32x512xf32>
    %10 = arith.mulf %7, %9 : vector<32x512xf32>
    %cst_8 = arith.constant dense<0.000000e+00> : vector<512xf32>
    %11 = vector.multi_reduction <add>, %10, %cst_8 [0] : vector<32x512xf32> to vector<512xf32>
    %12 = vector.shape_cast %11 : vector<512xf32> to vector<1x512xf32>
    %c0_9 = arith.constant 0 : index
    %13 = memref.load %arg5[%c0_9] : memref<1xf32, #tpu.memory_space<smem>>
    %14 = vector.broadcast %13 : f32 to vector<1x512xf32>
    %15 = arith.addf %12, %14 : vector<1x512xf32>
    %c0_10 = arith.constant 0 : index
    %c0_11 = arith.constant 0 : index
    %16 = vector.load %arg6[%c0_10, %c0_11] : memref<1x512xf32, #tpu.memory_space<vmem>>, vector<1x512xf32>
    tpu.vector_store %arg6[%c0_10, %c0_11], %15 {strides = array<i32>} : memref<1x512xf32, #tpu.memory_space<vmem>>, vector<1x512xf32>,
    return
  }
  func.func @transform_0(%arg0: i32) -> (i32, i32) {
    %c0_i32 = arith.constant 0 : i32
    %c0_i32_0 = arith.constant 0 : i32
    return %c0_i32, %arg0 : i32, i32
  }
  func.func @transform_1(%arg0: i32) -> (i32, i32) {
    %c0_i32 = arith.constant 0 : i32
    %c0_i32_0 = arith.constant 0 : i32
    %c0_i32_1 = arith.constant 0 : i32
    return %c0_i32, %c0_i32_0 : i32, i32
  }
  func.func @transform_2(%arg0: i32) -> (i32, i32) {
    %c0_i32 = arith.constant 0 : i32
    %c0_i32_0 = arith.constant 0 : i32
    %c0_i32_1 = arith.constant 0 : i32
    return %c0_i32, %c0_i32_0 : i32, i32
  }
  func.func @transform_3(%arg0: i32) -> (i32, i32) {
    %c0_i32 = arith.constant 0 : i32
    %c0_i32_0 = arith.constant 0 : i32
    %c0_i32_1 = arith.constant 0 : i32
    return %c0_i32, %c0_i32_0 : i32, i32
  }
  func.func @transform_4(%arg0: i32) -> i32 {
    %c0_i32 = arith.constant 0 : i32
    %c0_i32_0 = arith.constant 0 : i32
    return %c0_i32 : i32
  }
  func.func @transform_5(%arg0: i32) -> (i32, i32) {
    %c0_i32 = arith.constant 0 : i32
    %c0_i32_0 = arith.constant 0 : i32
    return %c0_i32, %arg0 : i32, i32
  }
}

</mosaic_0001>

<bundles_post_ra>
// kernel: tpu_custom_call.1
= control target key start
LH: loop header
LB: loop body
LE: loop exit
PB: predicated region body
PF: predicated region fallthrough
CT: control target
= control target key end

     0   :  { %s961_s0 = inlined_call_operand.vmem [shape: bf16[16,1024], index: 0, kind: input, shape index: {}]   ;;  %s962_s1 = inlined_call_operand.vmem [shape: bf16[32,16], index: 1, kind: input, shape index: {}]   ;;  %s963_s2 = inlined_call_operand.vmem [shape: f32[32,1], index: 2, kind: input, shape index: {}]   ;;  %s964_s3 = inlined_call_operand.vmem [shape: f32[32,1], index: 3, kind: input, shape index: {}]   ;;  %s965_s4 = inlined_call_operand.<no memory space> [shape: f32[1], index: 4, kind: input, shape index: {}]   ;;  %s966_s5 = inlined_call_operand.hbm [shape: f32[1,1024], index: 5, kind: output, shape index: {}]  }
   0x1   :  { %10 = sst [smem:[#allocation2]] %s965_s4 }
   0x2   :  { %11 = vsyncpa [#allocation5], 0 }
   0x3   :  { %13 = vsyncpa [#allocation5 + $0x1], 0  ;;  %s817_s20 = smov 0   ;;  %s819_s21 = smov 0  }
   0x4   :  { %s821_s22 = smov 0   ;;  %s823_s23 = smov 0  }
   0x5 LB: > { %s639_s4 = sadd.s32 4294967295, %s779_s23   ;;  %s640_s24 = sadd.s32 4294967294, %s779_s23   ;;  %s779_s23 = sphi %s823_s23, %s972_s23   ;;  %s775_s22 = sphi %s821_s22, %s971_s22   ;;  %s771_s21 = sphi %s819_s21, %s970_s21   ;;  %s767_s20 = sphi %s817_s20, %s969_s20  }
   0x6   : > { %s840_s25 = sadd.s32 1, %s779_s23   ;;  %s26_s26 = sadd.s32 1, %s775_s22 }
   0x7   : > { %s23_s27 = ssub.s32 %s779_s23, %s840_s25  ;;  %p33_p0 = scmp.ne.s32.totalorder %s775_s22, %s771_s21 }
   0x8   : > { %p24_p1 = scmp.eq.s32.totalorder %s23_s27, 0  ;;  %p34_p2 = scmp.eq.s32.totalorder %s779_s23, 0 }
   0x9   : > { %p147_p3 = scmp.eq.s32.totalorder %s639_s4, 1  ;;  %p152_p4 = scmp.ne.s32.totalorder %s771_s21, %s767_s20 }
   0xa   : > { %s853_s28 = scalar_select %p24_p1, %s775_s22, %s26_s26  }
   0xb   : > { %p35_p5 = por %p34_p2, %p33_p0  ;;  %p855_p6 = por %p147_p3, %p33_p0 }
   0xc   : > { %p153_p7 = scmp.eq.s32.totalorder %s640_s24, 1  ;;  %p642_p9 = scmp.ge.s32.totalorder %s779_s23, 2 }
   0xe   : > { %p859_p8 = por %p153_p7, %p152_p4  ;;  %181 = sbr.rel (%p642_p9) target bundleno = 28 (0x1c), region = 32 }
  0x15   : > { %184 = sbr.rel (!%p35_p5) target bundleno = 28 (0x1c), region = 36  ;;  %s186_s6 = sand.u32 (%p35_p5), 1, %s775_s22  }
  0x16   : > { %s664_s7 = sshll.u32 (%p35_p5), %s779_s23, 4  ;;  %s643_s8 = sshll.u32 (%p35_p5), %s186_s6, 5 }
  0x17   : > { %s191_s11 = scalar_lea.vmem (%p35_p5), %s961_s0, %s664_s7  ;;  %s188_s12 = scalar_lea.vmem (%p35_p5), [#allocation3], %s643_s8 }
  0x18   : > { %v204_v0 = vld [vmem:[%s191_s11] sm:$0xff] (%p35_p5)  ;;  %v206_v1 = vld [vmem:[%s191_s11 + $0x8] sm:$0xff] (%p35_p5) }
  0x19   : > { %v208_v2 = vld [vmem:[%s191_s11 + $0x20] sm:$0xff] (%p35_p5)  ;;  %205 = vst [vmem:[%s188_s12] sm:$0xff] (%p35_p5), %v204_v0  ;;  %207 = vst [vmem:[%s188_s12 + $0x8] sm:$0xff] (%p35_p5), %v206_v1  ;;  %v210_v3 = vld [vmem:[%s191_s11 + $0x28] sm:$0xff] (%p35_p5) }
  0x1a   : > { %209 = vst [vmem:[%s188_s12 + $0x10] sm:$0xff] (%p35_p5), %v208_v2  ;;  %211 = vst [vmem:[%s188_s12 + $0x18] sm:$0xff] (%p35_p5), %v210_v3 }
  0x1c PF: > { %p646_p10 = scmp.ge.s32.totalorder %s779_s23, 1  ;;  %p216_p11 = scmp.lt.s32.totalorder %s779_s23, 3 }
  0x1e   : > { %p217_p12 = pnand %p646_p10, %p216_p11 }
  0x1f   : > { %s874_s13 = sand.u32 (!%p217_p12), 1, %s771_s21   ;;  %v781_v4 = vmov (!%p217_p12), 0   ;;  %v261_v5 = vld [vmem:[%s963_s2] sm:$0xff] (!%p217_p12)  ;;  %v263_v6 = vld [vmem:[%s963_s2 + $0x10] sm:$0xff] (!%p217_p12)  ;;  %v262_v11 = vld [vmem:[%s963_s2 + $0x8] sm:$0xff] (!%p217_p12)  ;;  %vm315_vm0 = vcmask (!%p217_p12), 130048  }
  0x20   : > { %220 = sbr.rel (%p217_p12) target bundleno = 306 (0x132), region = 59  ;;  %s647_s14 = sshll.u32 (!%p217_p12), %s874_s13, 5  ;;  %354 = vmatprep.mubr.bf16.mxu0 (!%p217_p12), %v781_v4  ;;  %407 = vmatprep.mubr.bf16.mxu1 (!%p217_p12), %v781_v4  ;;  %v715_v12 = vld [vmem:[%s962_s1] sm:$0xff] (!%p217_p12)   ;;  %v264_v13 = vld [vmem:[%s963_s2 + $0x18] sm:$0xff] (!%p217_p12)  ;;  %v445_v15 = vld [vmem:[%s964_s3 + $0x8] sm:$0xff] (!%p217_p12) }
  0x21   : > { %707 = vset.pattern.permute.xlu0 (!%p217_p12), %v781_v4  ;;  %708 = vset.pattern.permute.xlu1 (!%p217_p12), %v781_v4  ;;  %s225_s19 = scalar_lea.vmem (!%p217_p12), [#allocation3], %s647_s14  ;;  %v444_v14 = vld [vmem:[%s964_s3] sm:$0xff] (!%p217_p12)  ;;  %v446_v16 = vld [vmem:[%s964_s3 + $0x10] sm:$0xff] (!%p217_p12)  ;;  %v447_v17 = vld [vmem:[%s964_s3 + $0x18] sm:$0xff] (!%p217_p12)  ;;  %s520_s24 = sld [smem:[#allocation2]] (!%p217_p12) }
  0x22   : > { %v709_v7 = vld [vmem:[%s225_s19 + $0x4] ss:$16 sps:$4 sm:$0xff] (!%p217_p12)   ;;  %267 = vperm.xlu0 (!%p217_p12), %707, %v261_v5   ;;  %277 = vperm.xlu1 (!%p217_p12), %708, %v263_v6   ;;  %v711_v8 = vld [vmem:[%s225_s19 + $0xc] ss:$16 sps:$4 sm:$0xff] (!%p217_p12)   ;;  %v713_v9 = vld [vmem:[%s225_s19] ss:$16 sps:$4 sm:$0xff] (!%p217_p12)  }
  0x23   : > { %322 = vmatprep.subr.bf16.mxu0 (!%p217_p12), %v709_v7  ;;  %v714_v10 = vld [vmem:[%s225_s19 + $0x8] ss:$16 sps:$4 sm:$0xff] (!%p217_p12)   ;;  %375 = vmatprep.subr.bf16.mxu1 (!%p217_p12), %v711_v8  ;;  %s648_s26 = sshll.u32 (!%p217_p12), %s874_s13, 2  ;;  %s665_s27 = sshll.u32 (!%p217_p12), %s639_s4, 6 }
  0x24   : > { %323 = vmatpush1.bf16.msra.mxu0 (!%p217_p12), %v713_v9  ;;  %376 = vmatpush1.bf16.msra.mxu1 (!%p217_p12), %v714_v10  ;;  %v716_v18 = vld [vmem:[%s962_s1 + $0x8] sm:$0xff] (!%p217_p12)   ;;  %s249_s6 = scalar_lea.vmem (!%p217_p12), [#allocation4], %s648_s26  ;;  %s917_s10 = scalar_lea.hbm (!%p217_p12), %s966_s5, %s665_s27 }
  0x25   : > { %s575_s7 = sshll.u32 (!%p217_p12), %s249_s6, 4  ;;  %s561_s11 = scalar_lea.sflag (!%p217_p12), [#allocation5], %s874_s13  ;;  %s919_s7 = int_to_ptr.vmem [resolvable:$true] %s575_s7 }
  0x26   : > { %272 = vperm.xlu0 (!%p217_p12), %707, %v262_v11   ;;  %282 = vperm.xlu1 (!%p217_p12), %708, %v264_v13   ;;  %s717_s12 = scalar_lea.vmem (!%p217_p12), %s919_s7, 64  ;;  %s783_s4 = smov (!%p217_p12), [#allocation4]  }
  0x27   : > { %655 = vmatmul.mubr.msk.bf16.vlgmr.msra.gmra.mrb[0].mxu0 %vm315_vm0, %v715_v12  ;;  %657 = vmatmul.mubr.msk.bf16.vlgmr.msra.gmra.mrb[0].mxu1 %vm315_vm0, %v715_v12  ;;  %p718_p13 = scmp.ne.s32.totalorder %s919_s7, %s717_s12  ;;  %s721_s14 = sshll.u32 %s783_s4, 4  ;;  %s722_s14 = int_to_ptr.vmem [resolvable:$false] %s721_s14 }
  0x28   : > { %364 = vmatprep.mubr.bf16.mxu0 %v781_v4  ;;  %417 = vmatprep.mubr.bf16.mxu1 %v781_v4  ;;  %s723_s15 = scalar_lea.vmem %s722_s14, 128  ;;  %p724_p2 = scmp.lt.s32.totalorder %s919_s7, %s722_s14 }
  0x29   : > { %p719_p0 = pnand %p718_p13, %p855_p6  ;;  %p725_p3 = scmp.lt.s32.totalorder %s723_s15, %s717_s12 }
  0x2a   : > { %450 = vperm.xlu0 %707, %v444_v14   ;;  %455 = vperm.xlu1 %708, %v445_v15  }
  0x2b   : > { %p720_p1 = pneg %p719_p0  ;;  %p726_p4 = por %p725_p3, %p724_p2 }
  0x2d   : > { %p727_p5 = pnand %p726_p4, %p720_p1 }
  0x2e   : > { %460 = vperm.xlu0 %707, %v446_v16   ;;  %465 = vperm.xlu1 %708, %v447_v17  }
  0x2f   : > { %656 = vmatmul.mubr.msk.bf16.gmra.mrb[4].mxu0 %vm315_vm0, %v716_v18  ;;  %658 = vmatmul.mubr.msk.bf16.gmra.mrb[4].mxu1 %vm315_vm0, %v716_v18 }
  0xa1   : > { %v268_v19 = vpop.permute.xlu0 %267  ;;  %v278_v20 = vpop.permute.xlu1 %277 }
  0xa5   : > { %v273_v21 = vpop.permute.xlu0 %272  ;;  %v283_v22 = vpop.permute.xlu1 %282 }
  0xa9   : > { %v451_v45 = vpop.permute.xlu0 %450  ;;  %v456_v46 = vpop.permute.xlu1 %455 }
  0xad   : > { %v461_v13 = vpop.permute.xlu0 %460 }
  0xfa   : > { %v356_v23 = vpop.f32.mrb[0].mxu0  ;;  %v409_v24 = vpop.f32.mrb[0].mxu1 }
  0xfb   : > { %v357_v25 = vadd.f32 %v356_v23, %v268_v19  ;;  %v410_v26 = vadd.f32 %v409_v24, %v268_v19  ;;  %v358_v27 = vpop.f32.mrb[1].mxu0  ;;  %v411_v28 = vpop.f32.mrb[1].mxu1 }
  0xfc   : > { %v359_v29 = vadd.f32 %v358_v27, %v268_v19  ;;  %v412_v30 = vadd.f32 %v411_v28, %v268_v19  ;;  %v360_v31 = vpop.f32.mrb[2].mxu0  ;;  %v413_v32 = vpop.f32.mrb[2].mxu1 }
  0xfd   : > { %v428_v33 = vmax.f32 %v357_v25, 0.0  ;;  %v430_v34 = vmax.f32 %v410_v26, 0.0  ;;  %v361_v35 = vadd.f32 %v360_v31, %v273_v21  ;;  %v414_v36 = vadd.f32 %v413_v32, %v273_v21  ;;  %v362_v37 = vpop.f32.mrb[3].mxu0  ;;  %v415_v38 = vpop.f32.mrb[3].mxu1 }
  0xfe   : > { %v429_v39 = vmax.f32 %v359_v29, 0.0  ;;  %v431_v40 = vmax.f32 %v412_v30, 0.0  ;;  %v363_v41 = vadd.f32 %v362_v37, %v273_v21  ;;  %v416_v42 = vadd.f32 %v415_v38, %v273_v21  ;;  %v466_v24 = vpop.permute.xlu1 %465 }
  0xff   : > { %v432_v43 = vmax.f32 %v361_v35, 0.0  ;;  %v434_v44 = vmax.f32 %v414_v36, 0.0  ;;  %v468_v49 = vmul.f32 %v451_v45, %v428_v33  ;;  %v470_v50 = vmul.f32 %v451_v45, %v430_v34 }
 0x100   : > { %v433_v47 = vmax.f32 %v363_v41, 0.0  ;;  %v435_v48 = vmax.f32 %v416_v42, 0.0  ;;  %v469_v53 = vmul.f32 %v451_v45, %v429_v39  ;;  %v471_v54 = vmul.f32 %v451_v45, %v431_v40 }
 0x101   : > { %v472_v51 = vmul.f32 %v456_v46, %v432_v43  ;;  %v474_v52 = vmul.f32 %v456_v46, %v434_v44 }
 0x102   : > { %v473_v55 = vmul.f32 %v456_v46, %v433_v47  ;;  %v475_v56 = vmul.f32 %v456_v46, %v435_v48  ;;  %v366_v57 = vpop.f32.mrb[4].mxu0  ;;  %v419_v58 = vpop.f32.mrb[4].mxu1 }
 0x103   : > { %v484_v59 = vadd.f32 %v472_v51, %v468_v49  ;;  %v502_v60 = vadd.f32 %v474_v52, %v470_v50  ;;  %v367_v61 = vadd.f32 %v366_v57, %v278_v20  ;;  %v420_v62 = vadd.f32 %v419_v58, %v278_v20  ;;  %v368_v63 = vpop.f32.mrb[5].mxu0  ;;  %v421_v0 = vpop.f32.mrb[5].mxu1 }
 0x104   : > { %v493_v1 = vadd.f32 %v473_v55, %v469_v53  ;;  %v511_v2 = vadd.f32 %v475_v56, %v471_v54  ;;  %v369_v3 = vadd.f32 %v368_v63, %v278_v20  ;;  %v422_v4 = vadd.f32 %v421_v0, %v278_v20  ;;  %v370_v5 = vpop.f32.mrb[6].mxu0  ;;  %v423_v6 = vpop.f32.mrb[6].mxu1 }
 0x105   : > { %v436_v7 = vmax.f32 %v367_v61, 0.0  ;;  %v438_v8 = vmax.f32 %v420_v62, 0.0  ;;  %v371_v9 = vadd.f32 %v370_v5, %v283_v22  ;;  %v424_v10 = vadd.f32 %v423_v6, %v283_v22  ;;  %v372_v11 = vpop.f32.mrb[7].mxu0  ;;  %v425_v12 = vpop.f32.mrb[7].mxu1 }
 0x106   : > { %v437_v14 = vmax.f32 %v369_v3, 0.0  ;;  %v439_v15 = vmax.f32 %v422_v4, 0.0  ;;  %v373_v16 = vadd.f32 %v372_v11, %v283_v22  ;;  %v426_v17 = vadd.f32 %v425_v12, %v283_v22 }
 0x107   : > { %v476_v18 = vmul.f32 %v461_v13, %v436_v7  ;;  %v478_v19 = vmul.f32 %v461_v13, %v438_v8  ;;  %v440_v21 = vmax.f32 %v371_v9, 0.0  ;;  %v442_v23 = vmax.f32 %v424_v10, 0.0 }
 0x108   : > { %v477_v25 = vmul.f32 %v461_v13, %v437_v14  ;;  %v479_v20 = vmul.f32 %v461_v13, %v439_v15  ;;  %v441_v26 = vmax.f32 %v373_v16, 0.0  ;;  %v443_v27 = vmax.f32 %v426_v17, 0.0 }
 0x109   : > { %v485_v28 = vadd.f32 %v484_v59, %v476_v18  ;;  %v503_v29 = vadd.f32 %v502_v60, %v478_v19  ;;  %v480_v30 = vmul.f32 %v466_v24, %v440_v21  ;;  %v482_v31 = vmul.f32 %v466_v24, %v442_v23 }
 0x10a   : > { %v494_v32 = vadd.f32 %v493_v1, %v477_v25  ;;  %v512_v33 = vadd.f32 %v511_v2, %v479_v20  ;;  %v481_v34 = vmul.f32 %v466_v24, %v441_v26  ;;  %v483_v35 = vmul.f32 %v466_v24, %v443_v27 }
 0x10b   : > { %v486_v36 = vadd.f32 %v485_v28, %v480_v30  ;;  %v504_v37 = vadd.f32 %v503_v29, %v482_v31  ;;  %v782_v51 = vmov 1966171168   ;;  %v535_v53 = vlaneseq }
 0x10c   : > { %v495_v22 = vadd.f32 %v494_v32, %v481_v34  ;;  %v513_v38 = vadd.f32 %v512_v33, %v483_v35  ;;  %v533_v52 = vunpack.c.l.s4 %v782_v51  ;;  %v521_v59 = vstv %s520_s24 }
 0x10d   : > { %v487_v39 = vrot.slane %v486_v36, 4  ;;  %v505_v40 = vrot.slane %v504_v37, 4  ;;  %v536_v0 = vshrl.u32 %v535_v53, 7  ;;  %vm557_vm1 = vcmp.lt.s32.totalorder %v535_v53, 512 }
 0x10e   : > { %v496_v41 = vrot.slane %v495_v22, 4  ;;  %v514_v42 = vrot.slane %v513_v38, 4  ;;  %v534_v63 = vunpack.c.0.s8 %v533_v52 }
 0x10f   : > { %v488_v43 = vadd.f32 %v487_v39, %v486_v36  ;;  %v506_v44 = vadd.f32 %v505_v40, %v504_v37 }
 0x110   : > { %v497_v45 = vadd.f32 %v496_v41, %v495_v22  ;;  %v515_v46 = vadd.f32 %v514_v42, %v513_v38  ;;  %v537_v9 = vsub.s32 %v534_v63, %v536_v0 }
 0x111   : > { %v489_v47 = vrot.slane %v488_v43, 2  ;;  %v507_v48 = vrot.slane %v506_v44, 2 }
 0x112   : > { %v498_v49 = vrot.slane %v497_v45, 2  ;;  %v516_v50 = vrot.slane %v515_v46, 2 }
 0x113   : > { %v490_v54 = vadd.f32 %v489_v47, %v488_v43  ;;  %v508_v55 = vadd.f32 %v507_v48, %v506_v44 }
 0x114   : > { %v499_v56 = vadd.f32 %v498_v49, %v497_v45  ;;  %v517_v57 = vadd.f32 %v516_v50, %v515_v46 }
 0x115   : > { %v491_v58 = vrot.slane %v490_v54, 1  ;;  %v509_v60 = vrot.slane %v508_v55, 1 }
 0x116   : > { %v500_v61 = vrot.slane %v499_v56, 1  ;;  %v518_v62 = vrot.slane %v517_v57, 1 }
 0x117   : > { %v492_v1 = vadd.f32 %v491_v58, %v490_v54  ;;  %v510_v2 = vadd.f32 %v509_v60, %v508_v55 }
 0x118   : > { %v501_v3 = vadd.f32 %v500_v61, %v499_v56  ;;  %v519_v4 = vadd.f32 %v518_v62, %v517_v57 }
 0x119   : > { %v522_v5 = vadd.f32 %v521_v59, %v492_v1  ;;  %v524_v6 = vadd.f32 %v521_v59, %v510_v2 }
 0x11a   : > { %v523_v7 = vadd.f32 %v521_v59, %v501_v3  ;;  %v525_v8 = vadd.f32 %v521_v59, %v519_v4 }
 0x11c   : > { %v530_v10 = vcombine.low %v522_v5, %v523_v7  ;;  %v531_v11 = vcombine.low %v524_v6, %v525_v8 }
 0x11e   : > { %v538_v12 = vrot.slane %v530_v10, %v537_v9  ;;  %v545_v13 = vrot.slane %v531_v11, %v537_v9 }
 0x120   : > { %v546_v14 = vcombine.low %v538_v12, %v545_v13 }
 0x122   : > { %v553_v15 = vrot.slane %v546_v14, %v537_v9 }
 0x124   : > { %559 = vst.msk [vmem:[%s249_s6] sm:$0xf] %vm557_vm1, %v553_v15 }
 0x125   : > { %730 = shalt.err (!%p727_p5)
}
 0x126   : > { %s731_s13 = scalar_lea.hbm %s917_s10, 64  ;;  %s735_s18 = scalar_lea.hbm %s966_s5, 128 }
 0x127   : > { %p732_p7 = scmp.ne.s32.totalorder %s917_s10, %s731_s13  ;;  %p736_p12 = scmp.lt.u32.totalorder %s917_s10, %s966_s5 }
 0x128   : > { %p737_p13 = scmp.lt.u32.totalorder %s735_s18, %s731_s13  ;;  %p739_p1 = scmp.lt.u32.totalorder %s731_s13, %s917_s10 }
 0x129   : > { %p733_p10 = pnand %p732_p7, %p855_p6 }
 0x12a   : > { %p738_p0 = por %p737_p13, %p736_p12 }
 0x12b   : > { %p734_p11 = pneg %p733_p10 }
 0x12c   : > { %p740_p2 = por %p739_p1, %p738_p0 }
 0x12e   : > { %p741_p3 = pnand %p740_p2, %p734_p11 }
 0x130   : > { %744 = shalt.err (!%p741_p3)
}
 0x131   : > { %666 = dma.vmem_to_hbm [thread:$0]  (%p855_p6), %s919_s7, 64, %s917_s10, %s561_s11  }
 0x132 PF: > { %s587_s26 = sand.u32 1, %s767_s20   ;;  %p669_p4 = pnand %p642_p9, %p859_p8 }
 0x133   : > { %s588_s27 = scalar_lea.sflag [#allocation5], %s587_s26 }
 0x134   : > { %762 = dma.done.wait (!%p669_p4), %s588_s27, 64  }
 0x135   : > { %764 = vsyncadd (!%p669_p4), %s588_s27, 4294967232  ;;  %p16_p5 = scmp.ge.s32.totalorder %s840_s25, 4   ;;  %s969_s20 = smov %s771_s21 }
 0x136   : > { %s970_s21 = smov %s775_s22  ;;  %s971_s22 = smov %s853_s28 }
 0x137   : > { %s972_s23 = smov %s840_s25  ;;  %18 = sbr.rel (!%p16_p5) target bundleno = 5 (0x5), region = 103 }
 0x13e   :  { %593 = vsyncpa [#allocation5], 1 }
 0x13f   :  { %595 = vsyncpa [#allocation5 + $0x1], 1 }

</bundles_post_ra>
